<compile_context>
chip_gen: v7x
topology: tpu7x:2x2x1
jax: 0.10.0
libtpu: 0.0.40
codegen_flags: <defaults>
</compile_context>

<pallas_src>
import functools
import math

import jax
import jax.numpy as jnp
from jax.experimental import pallas as pl
from jax.experimental.pallas import tpu as pltpu


def _round_up(x, m):
    return ((x + m - 1) // m) * m


def _make_gcn_kernel(apply_relu, use_residual):
    def kernel(*refs):
        if use_residual:
            adj_ref, h_ref, w_ref, b_ref, res_ref, o_ref, acc_ref = refs
        else:
            adj_ref, h_ref, w_ref, b_ref, o_ref, acc_ref = refs
            res_ref = None

        k = pl.program_id(1)

        @pl.when(k == 0)
        def _():
            acc_ref[...] = jnp.zeros_like(acc_ref)

        # Mean aggregation: row-normalized adjacency tile @ source-feature tile (MXU).
        acc_ref[...] += jnp.dot(adj_ref[...], h_ref[...],
                                preferred_element_type=jnp.float32)

        @pl.when(k == pl.num_programs(1) - 1)
        def _():
            # NodeApplyModule: linear + bias (BN already folded into w/b).
            z = jnp.dot(acc_ref[...].astype(w_ref.dtype), w_ref[...],
                        preferred_element_type=jnp.float32) + b_ref[...]
            if apply_relu:
                z = jnp.maximum(z, 0.0)
            if use_residual:
                z = z + res_ref[...].astype(jnp.float32)
            o_ref[...] = z.astype(o_ref.dtype)

    return kernel


def gcn_layer_forward(adj_norm, h, weight_t, bias, *, residual=False,
                      apply_relu=True, block_rows=None, block_src=None,
                      vmem_budget_bytes=24 * 1024 * 1024):
    """Fused GCN layer: relu((adj_norm @ h) @ weight_t + bias) [+ h residual].

    adj_norm: [N, N]            row-normalized (in-degree mean) adjacency
    h:        [N, in_dim]       node features
    weight_t: [in_dim, out_dim] linear weight, pre-transposed at init
    bias:     [out_dim]
    """
    n, in_dim = h.shape
    in_dim_w, out_dim = weight_t.shape
    assert in_dim_w == in_dim
    assert adj_norm.shape == (n, n)
    if residual:
        assert in_dim == out_dim, "residual requires in_dim == out_dim"

    dt_bytes = h.dtype.itemsize

    # ---- lane-dense output: pad out_dim to a multiple of 128 (sliced after) ----
    out_p = _round_up(out_dim, 128)
    if out_p != out_dim:
        weight_t = jnp.pad(weight_t, ((0, 0), (0, out_p - out_dim)))
        bias = jnp.pad(bias, (0, out_p - out_dim))
    b2 = bias.reshape(1, out_p)

    # ---- source-node (reduction) tile: multiple of 128 lanes for the adj tile ----
    if block_src is None:
        tk = min(512, _round_up(n, 128))
    else:
        tk = _round_up(block_src, 128)
    n_pk = _round_up(n, tk)

    # ---- node-row tile against a per-generation-safe VMEM budget ----
    if block_rows is None:
        tm = 512
        while tm > 8:
            need = 2 * (tm * tk + tk * in_dim + in_dim * out_p + out_p
                        + tm * out_p + (tm * out_p if residual else 0)) * dt_bytes
            need += tm * in_dim * 4  # f32 accumulator scratch
            if need <= vmem_budget_bytes:
                break
            tm //= 2
        tm = max(8, tm)
    else:
        tm = max(8, _round_up(block_rows, 8))
    tm = min(tm, _round_up(n, 8))
    n_pm = _round_up(n, tm)

    # ---- zero-pad operands (padded rows/cols contribute nothing / get sliced) ----
    adj_p = jnp.pad(adj_norm, ((0, n_pm - n), (0, n_pk - n)))
    h_src = jnp.pad(h, ((0, n_pk - n), (0, 0)))
    operands = [adj_p, h_src, weight_t, b2]
    in_specs = [
        pl.BlockSpec((tm, tk), lambda i, k: (i, k)),       # streamed adjacency tiles
        pl.BlockSpec((tk, in_dim), lambda i, k: (k, 0)),   # streamed source features
        pl.BlockSpec((in_dim, out_p), lambda i, k: (0, 0)),  # VMEM-resident weight
        pl.BlockSpec((1, out_p), lambda i, k: (0, 0)),       # VMEM-resident bias
    ]
    if residual:
        res_p = jnp.pad(h, ((0, n_pm - n), (0, out_p - out_dim)))
        operands.append(res_p)
        in_specs.append(pl.BlockSpec((tm, out_p), lambda i, k: (i, 0)))

    grid = (n_pm // tm, n_pk // tk)

    cost = pl.CostEstimate(
        flops=2 * n_pm * n_pk * in_dim + 2 * n_pm * in_dim * out_p,
        transcendentals=0,
        bytes_accessed=(n_pm * n_pk + n_pk * in_dim + in_dim * out_p + out_p
                        + n_pm * out_p * (2 if residual else 1)) * dt_bytes,
    )

    out = pl.pallas_call(
        _make_gcn_kernel(apply_relu, residual),
        out_shape=jax.ShapeDtypeStruct((n_pm, out_p), h.dtype),
        grid_spec=pltpu.PrefetchScalarGridSpec(
            num_scalar_prefetch=0,
            grid=grid,
            in_specs=in_specs,
            out_specs=pl.BlockSpec((tm, out_p), lambda i, k: (i, 0)),
            scratch_shapes=[pltpu.VMEM((tm, in_dim), jnp.float32)],
        ),
        compiler_params=pltpu.CompilerParams(
            dimension_semantics=("parallel", "arbitrary"),
        ),
        cost_estimate=cost,
    )(*operands)

    return out[:n, :out_dim]


def init_linear_params(key, in_dim, out_dim, dtype=jnp.float32):
    """nn.Linear-style init. Returns (weight [out,in], weight_t [in,out], bias)."""
    kw, kb = jax.random.split(key)
    bound = 1.0 / math.sqrt(in_dim)
    weight = jax.random.uniform(kw, (out_dim, in_dim), dtype, -bound, bound)
    bias = jax.random.uniform(kb, (out_dim,), dtype, -bound, bound)
    weight_t = jnp.asarray(weight.T)  # one-time transpose at init, not per call
    return weight, weight_t, bias


def fold_batchnorm_eval(weight_t, bias, gamma, beta, running_mean, running_var,
                        eps=1e-5):
    """Fold eval-mode BatchNorm1d into the preceding linear's weight/bias."""
    s = gamma / jnp.sqrt(running_var + eps)
    return weight_t * s[None, :], bias * s + beta - running_mean * s


if __name__ == "__main__":
    key = jax.random.PRNGKey(0)
    k_adj, k_h, k_p, k_bn, k2_adj, k2_h, k2_p = jax.random.split(key, 7)

    # ---------- case 1: small graph, BN(eval)+ReLU+residual, in_dim == out_dim ----------
    n, in_dim, out_dim = 12, 32, 32
    adj = jax.random.bernoulli(k_adj, 0.3, (n, n)).astype(jnp.float32)  # adj[i,j]: edge j->i
    deg = jnp.maximum(adj.sum(axis=1, keepdims=True), 1.0)
    adj_norm = adj / deg                                                # copy_u + mean reduce
    h = jax.random.normal(k_h, (n, in_dim), dtype=jnp.float32)
    weight, weight_t, bias = init_linear_params(k_p, in_dim, out_dim)

    kg, kb_, km, kv = jax.random.split(k_bn, 4)
    gamma = 1.0 + 0.1 * jax.random.normal(kg, (out_dim,), jnp.float32)
    beta = 0.1 * jax.random.normal(kb_, (out_dim,), jnp.float32)
    r_mean = 0.1 * jax.random.normal(km, (out_dim,), jnp.float32)
    r_var = jnp.abs(1.0 + 0.1 * jax.random.normal(kv, (out_dim,), jnp.float32))

    w_f, b_f = fold_batchnorm_eval(weight_t, bias, gamma, beta, r_mean, r_var)
    out1 = jax.block_until_ready(
        gcn_layer_forward(adj_norm, h, w_f, b_f, residual=True, apply_relu=True))

    agg = adj_norm @ h
    lin = agg @ weight.T + bias
    bn = gamma * (lin - r_mean) / jnp.sqrt(r_var + 1e-5) + beta
    ref1 = h + jnp.maximum(bn, 0.0)
    assert out1.shape == (n, out_dim)
    assert jnp.allclose(out1, ref1, atol=1e-4, rtol=1e-4)

    # ---------- case 2: ragged N, non-128 out_dim, forced multi-tile grid ----------
    n2, in2, out2 = 300, 64, 96
    adj2 = jax.random.bernoulli(k2_adj, 0.05, (n2, n2)).astype(jnp.float32)
    deg2 = jnp.maximum(adj2.sum(axis=1, keepdims=True), 1.0)
    adj2_norm = adj2 / deg2
    h2 = jax.random.normal(k2_h, (n2, in2), dtype=jnp.float32)
    w2, w2_t, b2v = init_linear_params(k2_p, in2, out2)

    out2_ = jax.block_until_ready(
        gcn_layer_forward(adj2_norm, h2, w2_t, b2v, residual=False,
                          apply_relu=True, block_rows=64, block_src=128))
    ref2 = jnp.maximum((adj2_norm @ h2) @ w2.T + b2v, 0.0)
    assert out2_.shape == (n2, out2)
    assert jnp.allclose(out2_, ref2, atol=1e-4, rtol=1e-4)

    print("KERNEL_OK")
</pallas_src>

<mosaic_0001>
module attributes {stable_mosaic.version = 11 : i64} {
  func.func @kernel(%arg0: i32, %arg1: i32, %arg2: memref<16x128xf32, #tpu.memory_space<vmem>>, %arg3: memref<128x32xf32, #tpu.memory_space<vmem>>, %arg4: memref<32x128xf32, #tpu.memory_space<vmem>>, %arg5: memref<1x128xf32, #tpu.memory_space<vmem>>, %arg6: memref<16x128xf32, #tpu.memory_space<vmem>>, %arg7: memref<16x128xf32, #tpu.memory_space<vmem>>, %arg8: memref<16x32xf32, #tpu.memory_space<vmem>>) attributes {dimension_semantics = [#tpu.dimension_semantics<parallel>, #tpu.dimension_semantics<arbitrary>], iteration_bounds = array<i64: 1, 1>, scalar_prefetch = 0 : i64, scratch_operands = 1 : i64, tpu.core_type = #tpu.core_type<tc>, window_params = [{transform_indices = @transform_0, window_bounds = array<i64: 16, 128>}, {transform_indices = @transform_1, window_bounds = array<i64: 128, 32>}, {pipeline_mode = #tpu.pipeline_mode<synchronous>, transform_indices = @transform_2, window_bounds = array<i64: 32, 128>}, {pipeline_mode = #tpu.pipeline_mode<synchronous>, transform_indices = @transform_3, window_bounds = array<i64: 1, 128>}, {transform_indices = @transform_4, window_bounds = array<i64: 16, 128>}, {transform_indices = @transform_5, window_bounds = array<i64: 16, 128>}]} {
    %c0_i32 = arith.constant 0 : i32
    %0 = arith.cmpi eq, %arg1, %c0_i32 : i32
    %1 = arith.extui %0 : i1 to i32
    %c0_i32_0 = arith.constant 0 : i32
    %2 = arith.cmpi ne, %1, %c0_i32_0 : i32
    scf.if %2 {
      %cst_10 = arith.constant 0.000000e+00 : f32
      %12 = vector.broadcast %cst_10 : f32 to vector<16x32xf32>
      %c0_11 = arith.constant 0 : index
      %c0_12 = arith.constant 0 : index
      %13 = vector.load %arg8[%c0_11, %c0_12] : memref<16x32xf32, #tpu.memory_space<vmem>>, vector<16x32xf32>
      tpu.vector_store %arg8[%c0_11, %c0_12], %12 {strides = array<i32>} : memref<16x32xf32, #tpu.memory_space<vmem>>, vector<16x32xf32>,
    } else {
    }
    %c0 = arith.constant 0 : index
    %c0_1 = arith.constant 0 : index
    %3 = vector.load %arg8[%c0, %c0_1] : memref<16x32xf32, #tpu.memory_space<vmem>>, vector<16x32xf32>
    %c0_2 = arith.constant 0 : index
    %c0_3 = arith.constant 0 : index
    %4 = vector.load %arg2[%c0_2, %c0_3] : memref<16x128xf32, #tpu.memory_space<vmem>>, vector<16x128xf32>
    %c0_4 = arith.constant 0 : index
    %c0_5 = arith.constant 0 : index
    %5 = vector.load %arg3[%c0_4, %c0_5] : memref<128x32xf32, #tpu.memory_space<vmem>>, vector<128x32xf32>
    %cst = arith.constant dense<0.000000e+00> : vector<16x32xf32>
    %6 = tpu.matmul %4, %5, %cst {dimension_numbers = #tpu.dot_dimension_numbers<[1], [0], [0], [1], [0, 0, 1, 1], [], []>} : vector<16x128xf32>, vector<128x32xf32>, vector<16x32xf32> -> vector<16x32xf32>
    %7 = arith.addf %3, %6 : vector<16x32xf32>
    %c0_6 = arith.constant 0 : index
    %c0_7 = arith.constant 0 : index
    %8 = vector.load %arg8[%c0_6, %c0_7] : memref<16x32xf32, #tpu.memory_space<vmem>>, vector<16x32xf32>
    tpu.vector_store %arg8[%c0_6, %c0_7], %7 {strides = array<i32>} : memref<16x32xf32, #tpu.memory_space<vmem>>, vector<16x32xf32>,
    %c0_i32_8 = arith.constant 0 : i32
    %9 = arith.cmpi eq, %arg1, %c0_i32_8 : i32
    %10 = arith.extui %9 : i1 to i32
    %c0_i32_9 = arith.constant 0 : i32
    %11 = arith.cmpi ne, %10, %c0_i32_9 : i32
    scf.if %11 {
      %c0_10 = arith.constant 0 : index
      %c0_11 = arith.constant 0 : index
      %12 = vector.load %arg8[%c0_10, %c0_11] : memref<16x32xf32, #tpu.memory_space<vmem>>, vector<16x32xf32>
      %c0_12 = arith.constant 0 : index
      %c0_13 = arith.constant 0 : index
      %13 = vector.load %arg4[%c0_12, %c0_13] : memref<32x128xf32, #tpu.memory_space<vmem>>, vector<32x128xf32>
      %cst_14 = arith.constant dense<0.000000e+00> : vector<16x128xf32>
      %14 = tpu.matmul %12, %13, %cst_14 {dimension_numbers = #tpu.dot_dimension_numbers<[1], [0], [0], [1], [0, 0, 1, 1], [], []>} : vector<16x32xf32>, vector<32x128xf32>, vector<16x128xf32> -> vector<16x128xf32>
      %c0_15 = arith.constant 0 : index
      %c0_16 = arith.constant 0 : index
      %15 = vector.load %arg5[%c0_15, %c0_16] : memref<1x128xf32, #tpu.memory_space<vmem>>, vector<1x128xf32>
      %16 = vector.broadcast %15 : vector<1x128xf32> to vector<16x128xf32>
      %17 = arith.addf %14, %16 : vector<16x128xf32>
      %cst_17 = arith.constant 0.000000e+00 : f32
      %18 = vector.broadcast %cst_17 : f32 to vector<16x128xf32>
      %19 = arith.maximumf %17, %18 : vector<16x128xf32>
      %c0_18 = arith.constant 0 : index
      %c0_19 = arith.constant 0 : index
      %20 = vector.load %arg6[%c0_18, %c0_19] : memref<16x128xf32, #tpu.memory_space<vmem>>, vector<16x128xf32>
      %21 = arith.addf %19, %20 : vector<16x128xf32>
      %c0_20 = arith.constant 0 : index
      %c0_21 = arith.constant 0 : index
      %22 = vector.load %arg7[%c0_20, %c0_21] : memref<16x128xf32, #tpu.memory_space<vmem>>, vector<16x128xf32>
      tpu.vector_store %arg7[%c0_20, %c0_21], %21 {strides = array<i32>} : memref<16x128xf32, #tpu.memory_space<vmem>>, vector<16x128xf32>,
    } else {
    }
    return
  }
  func.func @transform_0(%arg0: i32, %arg1: i32) -> (i32, i32) {
    %c0_i32 = arith.constant 0 : i32
    return %arg0, %arg1 : i32, i32
  }
  func.func @transform_1(%arg0: i32, %arg1: i32) -> (i32, i32) {
    %c0_i32 = arith.constant 0 : i32
    %c0_i32_0 = arith.constant 0 : i32
    return %arg1, %c0_i32 : i32, i32
  }
  func.func @transform_2(%arg0: i32, %arg1: i32) -> (i32, i32) {
    %c0_i32 = arith.constant 0 : i32
    %c0_i32_0 = arith.constant 0 : i32
    %c0_i32_1 = arith.constant 0 : i32
    return %c0_i32, %c0_i32_0 : i32, i32
  }
  func.func @transform_3(%arg0: i32, %arg1: i32) -> (i32, i32) {
    %c0_i32 = arith.constant 0 : i32
    %c0_i32_0 = arith.constant 0 : i32
    %c0_i32_1 = arith.constant 0 : i32
    return %c0_i32, %c0_i32_0 : i32, i32
  }
  func.func @transform_4(%arg0: i32, %arg1: i32) -> (i32, i32) {
    %c0_i32 = arith.constant 0 : i32
    %c0_i32_0 = arith.constant 0 : i32
    return %arg0, %c0_i32 : i32, i32
  }
  func.func @transform_5(%arg0: i32, %arg1: i32) -> (i32, i32) {
    %c0_i32 = arith.constant 0 : i32
    %c0_i32_0 = arith.constant 0 : i32
    return %arg0, %c0_i32 : i32, i32
  }
}

</mosaic_0001>

<bundles_post_ra>
// kernel: tpu_custom_call.1
= control target key start
LH: loop header
LB: loop body
LE: loop exit
PB: predicated region body
PF: predicated region fallthrough
CT: control target
= control target key end

     0   :  { %vm25_vm0 = vcmask 261120   ;;  %v390_v5 = vmov 0.0   ;;  %s517_s0 = inlined_call_operand.vmem [shape: f32[16,128], index: 0, kind: input, shape index: {}]   ;;  %s518_s1 = inlined_call_operand.vmem [shape: f32[128,32], index: 1, kind: input, shape index: {}]   ;;  %s519_s2 = inlined_call_operand.vmem [shape: f32[32,128], index: 2, kind: input, shape index: {}]   ;;  %s520_s3 = inlined_call_operand.vmem [shape: f32[1,128], index: 3, kind: input, shape index: {}]   ;;  %s521_s4 = inlined_call_operand.vmem [shape: f32[16,128], index: 4, kind: input, shape index: {}]   ;;  %s522_s5 = inlined_call_operand.hbm [shape: f32[16,128], index: 5, kind: output, shape index: {}]  }
   0x1   :  { %v32_v0 = vld [vmem:[%s518_s1] sm:$0xff]  ;;  %v33_v1 = vld [vmem:[%s518_s1 + $0x8] sm:$0xff]  ;;  %v34_v2 = vld [vmem:[%s518_s1 + $0x10] sm:$0xff]  ;;  %27 = vst.msk [vmem:[#allocation2 + $0x8] sm:$0xff] %vm25_vm0, %v390_v5 }
   0x2   :  { %v322_v3 = vpack.c.bf16 %v33_v1, %v32_v0  ;;  %v35_v4 = vld [vmem:[%s518_s1 + $0x18] sm:$0xff]  ;;  %26 = vst.msk [vmem:[#allocation2] sm:$0xff] %vm25_vm0, %v390_v5  ;;  %v36_v7 = vld [vmem:[%s518_s1 + $0x20] sm:$0xff]  ;;  %v37_v8 = vld [vmem:[%s518_s1 + $0x28] sm:$0xff] }
   0x3   :  { %v326_v6 = vpack.c.bf16 %v35_v4, %v34_v2  ;;  %v330_v9 = vpack.c.bf16 %v37_v8, %v36_v7  ;;  %v30_v10 = vld [vmem:[%s517_s0] sm:$0xff]  ;;  %v38_v11 = vld [vmem:[%s518_s1 + $0x30] sm:$0xff]  ;;  %v39_v12 = vld [vmem:[%s518_s1 + $0x38] sm:$0xff] }
   0x4   :  { %323 = vmatprep.subr.bf16.mxu0 %v322_v3  ;;  %308 = vmatprep.mubr.f32.mxu0 %v30_v10 }
   0x5   :  { %325 = vmatpush3.bf16.msra.mxu0 %v322_v3 }
   0x6   :  { %327 = vmatprep.subr.bf16.mxu0 %v326_v6 }
   0x7   :  { %10 = vsyncpa [#allocation4], 0  ;;  %v334_v13 = vpack.c.bf16 %v39_v12, %v38_v11  ;;  %v40_v14 = vld [vmem:[%s518_s1 + $0x40] sm:$0xff]  ;;  %v41_v15 = vld [vmem:[%s518_s1 + $0x48] sm:$0xff]  ;;  %s391_s13 = smov [#allocation3]  }
   0x8   :  { %v338_v16 = vpack.c.bf16 %v41_v15, %v40_v14  ;;  %v42_v17 = vld [vmem:[%s518_s1 + $0x50] sm:$0xff]  ;;  %v43_v18 = vld [vmem:[%s518_s1 + $0x58] sm:$0xff]  ;;  %v44_v20 = vld [vmem:[%s518_s1 + $0x60] sm:$0xff]  ;;  %s238_s14 = sshll.u32 %s391_s13, 4  ;;  %s239_s14 = int_to_ptr.vmem [resolvable:$true] %s238_s14 }
   0x9   :  { %329 = vmatpush3.bf16.msra.mxu0 %v326_v6  ;;  %v342_v19 = vpack.c.bf16 %v43_v18, %v42_v17  ;;  %v45_v21 = vld [vmem:[%s518_s1 + $0x68] sm:$0xff]  ;;  %v46_v23 = vld [vmem:[%s518_s1 + $0x70] sm:$0xff]  ;;  %v47_v24 = vld [vmem:[%s518_s1 + $0x78] sm:$0xff]  ;;  %p371_p1 = scmp.lt.s32.totalorder %s239_s14, %s239_s14 }
   0xa   :  { %331 = vmatprep.subr.bf16.mxu0 %v330_v9  ;;  %v346_v22 = vpack.c.bf16 %v45_v21, %v44_v20  ;;  %v350_v25 = vpack.c.bf16 %v47_v24, %v46_v23  ;;  %v31_v26 = vld [vmem:[%s517_s0 + $0x8] sm:$0xff]  ;;  %v133_v27 = vld [vmem:[%s519_s2] sm:$0xff]  ;;  %v135_v30 = vld [vmem:[%s519_s2 + $0x10] sm:$0xff] }
   0xb   :  { %v134_v28 = vld [vmem:[%s519_s2 + $0x8] sm:$0xff]  ;;  %v136_v31 = vld [vmem:[%s519_s2 + $0x18] sm:$0xff]  ;;  %v28_v34 = vld [vmem:[#allocation2] sm:$0xff] }
   0xc   :  { %v354_v29 = vpack.c.bf16 %v134_v28, %v133_v27  ;;  %v358_v32 = vpack.c.bf16 %v136_v31, %v135_v30  ;;  %v29_v33 = vld [vmem:[#allocation2 + $0x8] sm:$0xff]  ;;  %v249_v41 = vld [vmem:[%s520_s3] ss:$0 sm:$0xff]  ;;  %s366_s3 = scalar_lea.vmem %s239_s14, 256 }
   0xd   :  { %333 = vmatpush3.bf16.msra.mxu0 %v330_v9  ;;  %v228_v45 = vld [vmem:[%s521_s4 + $0x8] sm:$0xff]  ;;  %v227_v48 = vld [vmem:[%s521_s4] sm:$0xff]  ;;  %p367_p0 = scmp.ne.s32.totalorder %s239_s14, %s366_s3  ;;  %p372_p2 = scmp.lt.s32.totalorder %s366_s3, %s366_s3 }
   0xe   :  { %335 = vmatprep.subr.bf16.mxu0 %v334_v13  ;;  %355 = vmatprep.subr.bf16.mxu1 %v354_v29 }
   0xf   :  { %357 = vmatpush3.bf16.msra.mxu1 %v354_v29  ;;  %p373_p3 = por %p372_p2, %p371_p1 }
  0x10   :  { %359 = vmatprep.subr.bf16.mxu1 %v358_v32 }
  0x11   :  { %337 = vmatpush3.bf16.msra.mxu0 %v334_v13  ;;  %p374_p4 = pnand %p373_p3, %p367_p0 }
  0x12   :  { %339 = vmatprep.subr.bf16.mxu0 %v338_v16 }
  0x13   :  { %361 = vmatpush3.bf16.msra.mxu1 %v358_v32 }
  0x15   :  { %341 = vmatpush3.bf16.msra.mxu0 %v338_v16 }
  0x16   :  { %343 = vmatprep.subr.bf16.mxu0 %v342_v19 }
  0x19   :  { %345 = vmatpush3.bf16.msra.mxu0 %v342_v19 }
  0x1a   :  { %347 = vmatprep.subr.bf16.mxu0 %v346_v22 }
  0x1d   :  { %349 = vmatpush3.bf16.msra.mxu0 %v346_v22 }
  0x1e   :  { %351 = vmatprep.subr.bf16.mxu0 %v350_v25 }
  0x21   :  { %353 = vmatpush3.bf16.msra.mxu0 %v350_v25 }
  0x24   :  { %309 = vmatmul.mubr.f32.vlgmr.msra.gmra.mrb[0].mxu0 %v31_v26 }
  0xf7   :  { %v310_v35 = vpop.f32.mrb[0].mxu0 }
  0xf8   :  { %v124_v36 = vadd.f32 %v310_v35, %v29_v33  ;;  %v114_v37 = vpop.f32.mrb[1].mxu0 }
  0xf9   :  { %v123_v38 = vadd.f32 %v114_v37, %v28_v34 }
  0xfa   :  { %127 = vst.msk [vmem:[#allocation2 + $0x8] sm:$0xff] %vm25_vm0, %v124_v36 }
  0xfb   :  { %126 = vst.msk [vmem:[#allocation2] sm:$0xff] %vm25_vm0, %v123_v38 }
 0x101   :  { %v132_v40 = vld [vmem:[#allocation2 + $0x8] sm:$0xff] }
 0x102   :  { %v131_v39 = vld [vmem:[#allocation2] sm:$0xff] }
 0x103   :  { %319 = vmatprep.mubr.msk.f32.mxu1 %vm25_vm0, %v131_v39 }
 0x104   :  { %320 = vmatmul.mubr.msk.f32.vlgmr.msra.gmra.mrb[0].mxu1 %vm25_vm0, %v132_v40 }
 0x1d7   :  { %v321_v42 = vpop.f32.mrb[0].mxu1 }
 0x1d8   :  { %v222_v43 = vadd.f32 %v321_v42, %v249_v41  ;;  %v216_v44 = vpop.f32.mrb[1].mxu1 }
 0x1d9   :  { %v217_v46 = vadd.f32 %v249_v41, %v216_v44 }
 0x1da   :  { %v226_v47 = vmax.f32 %v222_v43, 0.0 }
 0x1db   :  { %v225_v49 = vmax.f32 %v217_v46, 0.0 }
 0x1dc   :  { %v230_v50 = vadd.f32 %v228_v45, %v226_v47 }
 0x1dd   :  { %v229_v51 = vadd.f32 %v227_v48, %v225_v49 }
 0x1de   :  { %232 = vst [vmem:[#allocation3 + $0x8] sm:$0xff] %v230_v50 }
 0x1df   :  { %231 = vst [vmem:[#allocation3] sm:$0xff] %v229_v51 }
 0x1e0   :  { %377 = shalt.err (!%p374_p4)
}
 0x1e1   :  { %s378_s19 = scalar_lea.hbm %s522_s5, 256 }
 0x1e2   :  { %p379_p5 = scmp.ne.s32.totalorder %s522_s5, %s378_s19  ;;  %p382_p6 = scmp.lt.u32.totalorder %s378_s19, %s522_s5 }
 0x1e4   :  { %p384_p7 = pnand %p382_p6, %p379_p5 }
 0x1e6   :  { %387 = shalt.err (!%p384_p7)
}
 0x1e7   :  { %s392_s23 = smov 128   ;;  %s393_s24 = smov 8  }
 0x1e8   :  { %244 = dma.vmem_to_hbm [thread:$0]  %s239_s14, 256, %s522_s5, [#allocation4], %s392_s23, %s392_s23, %s393_s24  }
 0x1e9   :  { %388 = dma.done.wait [#allocation4], 256  }
 0x1ea   :  { %389 = vsyncadd [#allocation4], 4294967040 }
 0x1eb   :  { %248 = vsyncpa [#allocation4], 1 }

</bundles_post_ra>
